<compile_context>
chip_gen: v6e
topology: v6e:2x2x1
jax: 0.10.0
libtpu: 0.0.40
codegen_flags: <defaults>
</compile_context>

<pallas_src>
import functools

import jax
import jax.numpy as jnp
from jax.experimental import pallas as pl
from jax.experimental.pallas import tpu as pltpu

HIDDEN = 32


def heat_mlp_kernel(t_ref, x_ref, w1_ref, wh_ref, w5_ref, bh_ref, b5_ref, o_ref,
                    *, act_dtype):
    # Activations are (features, tile): batch on lanes, features on sublanes.
    tt = t_ref[...]                                   # (1, tile) f32
    xx = x_ref[...]                                   # (1, tile) f32
    w1 = w1_ref[...]                                  # (32, 2)   torch layout (out, in)

    # Layer 1 has a contraction depth of only 2 — VPU broadcast multiply-adds,
    # no MXU round trip. Bias add in f32, then cast for the (cheap, native EUP) tanh.
    z = w1[:, 0:1] * tt + w1[:, 1:2] * xx + bh_ref[0]           # (32, tile) f32
    h = jnp.tanh(z.astype(act_dtype))                           # (32, tile) act_dtype

    # Layers 2-4: (32,32) @ (32,tile) on the MXU with f32 accumulation.
    # Weights are pre-cast to act_dtype in the wrapper so both MXU operands match.
    for l in range(3):
        z = jnp.dot(wh_ref[l], h,
                    preferred_element_type=jnp.float32) + bh_ref[l + 1]
        h = jnp.tanh(z.astype(act_dtype))                       # (32, tile)

    # Layer 5: (1,32) @ (32,tile) -> lane-dense (1,tile); f32 store.
    y = jnp.dot(w5_ref[...], h, preferred_element_type=jnp.float32) + b5_ref[...]
    o_ref[...] = y.astype(o_ref.dtype)


def _device_policy():
    """Per-generation tile / dtype policy (performance review targets)."""
    kind = jax.devices()[0].device_kind.lower()
    if "v7" in kind:
        # 64 MiB VMEM, 2 TCs/chip: big tiles but keep >=2 grid steps; bf16 EUP/VPU.
        return dict(block_cols=32768, act_dtype=jnp.bfloat16, two_tiles=True)
    if "v6" in kind:
        return dict(block_cols=32768, act_dtype=jnp.bfloat16, two_tiles=False)
    # v5e / v5p / unknown: no bf16 VPU-EUP path assumed -> keep f32, moderate tile.
    return dict(block_cols=16384, act_dtype=jnp.float32, two_tiles=False)


def heat_forward(t, x, params, *, block_cols=None, act_dtype=None):
    """t, x: (N, 1) float32. params: [(W (out,in), b (out,))] in PyTorch layout.
    Returns (N, 1) float32."""
    pol = _device_policy()
    if block_cols is None:
        block_cols = pol["block_cols"]
    if act_dtype is None:
        act_dtype = pol["act_dtype"]

    N = t.shape[0]
    tt = t.reshape(1, N).astype(jnp.float32)          # free reshape, no concat
    xx = x.reshape(1, N).astype(jnp.float32)

    # Lane-dense tiling: tile is a multiple of 128; no wrapper padding — Pallas
    # masks the partial last block and the OOB lanes are sliced away below.
    tile = min(block_cols, ((N + 127) // 128) * 128)
    if pol["two_tiles"] and N > 256 and pl.cdiv(N, tile) < 2:
        # v7x megacore: make sure both TensorCores get at least one tile.
        half = pl.cdiv(N, 2)
        tile = max(128, pl.cdiv(half, 128) * 128)
    grid = (pl.cdiv(N, tile),)

    (w1, b1), (w2, b2), (w3, b3), (w4, b4), (w5, b5) = params
    wh = jnp.stack([w2, w3, w4]).astype(act_dtype)    # (3, 32, 32) MXU operand dtype
    w5a = w5.astype(act_dtype)                        # (1, 32)
    bh = jnp.stack([b1, b2, b3, b4])[..., None].astype(jnp.float32)   # (4, 32, 1)
    b5c = b5.reshape(1, 1).astype(jnp.float32)        # (1, 1)

    row_spec = pl.BlockSpec((1, tile), lambda i: (0, i))

    def full_spec(shape):
        # Constant index_map: block is resident, not re-DMA'd per grid step.
        nd = len(shape)
        return pl.BlockSpec(shape, lambda i, nd=nd: (0,) * nd)

    # Advisory cost: 2*N*(2*32 + 3*32*32 + 32) flops, 4*32 tanh per element,
    # ~12 B/element of HBM traffic (+ tiny weights).
    cost = pl.CostEstimate(flops=2 * 3168 * N,
                           transcendentals=128 * N,
                           bytes_accessed=12 * N + 16384)

    y = pl.pallas_call(
        functools.partial(heat_mlp_kernel, act_dtype=act_dtype),
        out_shape=jax.ShapeDtypeStruct((1, N), jnp.float32),
        grid_spec=pltpu.PrefetchScalarGridSpec(
            num_scalar_prefetch=0,
            grid=grid,
            in_specs=[
                row_spec, row_spec,                   # t, x rows (1, tile)
                full_spec(w1.shape),                  # (32, 2)   f32 (VPU layer)
                full_spec(wh.shape),                  # (3, 32, 32) act_dtype
                full_spec(w5a.shape),                 # (1, 32)   act_dtype
                full_spec(bh.shape),                  # (4, 32, 1) f32
                full_spec(b5c.shape),                 # (1, 1)    f32
            ],
            out_specs=row_spec,
        ),
        compiler_params=pltpu.CompilerParams(
            dimension_semantics=("parallel",),
            vmem_limit_bytes=48 * 1024 * 1024),
        cost_estimate=cost,
    )(tt, xx, w1, wh, w5a, bh, b5c)

    return y[0, :N].reshape(N, 1)


def init_params(key):
    """Deterministic init matching nn.Linear: W stored (out, in), b (out,)."""
    dims = [(2, HIDDEN), (HIDDEN, HIDDEN), (HIDDEN, HIDDEN),
            (HIDDEN, HIDDEN), (HIDDEN, 1)]
    params = []
    for fan_in, fan_out in dims:
        key, kw, kb = jax.random.split(key, 3)
        bound = 1.0 / (fan_in ** 0.5)
        w = jax.random.uniform(kw, (fan_out, fan_in), jnp.float32, -bound, bound)
        b = jax.random.uniform(kb, (fan_out,), jnp.float32, -bound, bound)
        params.append((w, b))
    return params


def heat_forward_ref(t, x, params):
    xs = jnp.concatenate([t, x], axis=1)
    h = xs
    for i, (w, b) in enumerate(params):
        h = h @ w.T + b
        if i < len(params) - 1:
            h = jnp.tanh(h)
    return h


if __name__ == "__main__":
    key = jax.random.PRNGKey(0)
    kp, kt, kx = jax.random.split(key, 3)

    params = init_params(kp)

    N = 300                                   # ragged batch: exercises partial-block path
    t = jax.random.uniform(kt, (N, 1), jnp.float32)
    x = jax.random.uniform(kx, (N, 1), jnp.float32)

    y = heat_forward(t, x, params)
    y = jax.block_until_ready(y)

    y_ref = heat_forward_ref(t, x, params)
    assert y.shape == (N, 1)

    # bf16-activation path (v6e/v7x) deliberately loosens tolerance; f32 path stays tight.
    pol = _device_policy()
    tol = 5e-2 if pol["act_dtype"] == jnp.bfloat16 else 1e-5
    max_err = float(jnp.max(jnp.abs(y - y_ref)))
    assert jnp.allclose(y, y_ref, atol=tol, rtol=tol), f"max abs err {max_err}"

    print("KERNEL_OK")
</pallas_src>

<mosaic_0001>
module attributes {stable_mosaic.version = 11 : i64} {
  func.func @heat_mlp_kernel(%arg0: i32, %arg1: memref<1x384xf32, #tpu.memory_space<vmem>>, %arg2: memref<1x384xf32, #tpu.memory_space<vmem>>, %arg3: memref<32x2xf32, #tpu.memory_space<vmem>>, %arg4: memref<3x32x32xf32, #tpu.memory_space<vmem>>, %arg5: memref<1x32xf32, #tpu.memory_space<vmem>>, %arg6: memref<4x32x1xf32, #tpu.memory_space<vmem>>, %arg7: memref<1x1xf32, #tpu.memory_space<vmem>>, %arg8: memref<1x384xf32, #tpu.memory_space<vmem>>) attributes {dimension_semantics = [#tpu.dimension_semantics<parallel>], iteration_bounds = array<i64: 1>, scalar_prefetch = 0 : i64, scratch_operands = 0 : i64, tpu.core_type = #tpu.core_type<tc>, window_params = [{transform_indices = @transform_0, window_bounds = array<i64: 1, 384>}, {transform_indices = @transform_1, window_bounds = array<i64: 1, 384>}, {pipeline_mode = #tpu.pipeline_mode<synchronous>, transform_indices = @transform_2, window_bounds = array<i64: 32, 2>}, {pipeline_mode = #tpu.pipeline_mode<synchronous>, transform_indices = @transform_3, window_bounds = array<i64: 3, 32, 32>}, {pipeline_mode = #tpu.pipeline_mode<synchronous>, transform_indices = @transform_4, window_bounds = array<i64: 1, 32>}, {pipeline_mode = #tpu.pipeline_mode<synchronous>, transform_indices = @transform_5, window_bounds = array<i64: 4, 32, 1>}, {pipeline_mode = #tpu.pipeline_mode<synchronous>, transform_indices = @transform_6, window_bounds = array<i64: 1, 1>}, {transform_indices = @transform_7, window_bounds = array<i64: 1, 384>}]} {
    %c0 = arith.constant 0 : index
    %c0_0 = arith.constant 0 : index
    %0 = vector.load %arg1[%c0, %c0_0] : memref<1x384xf32, #tpu.memory_space<vmem>>, vector<1x384xf32>
    %c0_1 = arith.constant 0 : index
    %c0_2 = arith.constant 0 : index
    %1 = vector.load %arg2[%c0_1, %c0_2] : memref<1x384xf32, #tpu.memory_space<vmem>>, vector<1x384xf32>
    %c0_3 = arith.constant 0 : index
    %c0_4 = arith.constant 0 : index
    %2 = vector.load %arg3[%c0_3, %c0_4] : memref<32x2xf32, #tpu.memory_space<vmem>>, vector<32x2xf32>
    %3 = vector.extract_strided_slice %2 {offsets = [0, 0], sizes = [32, 1], strides = [1, 1]} : vector<32x2xf32> to vector<32x1xf32>
    %4 = vector.broadcast %3 : vector<32x1xf32> to vector<32x384xf32>
    %5 = vector.broadcast %0 : vector<1x384xf32> to vector<32x384xf32>
    %6 = arith.mulf %4, %5 : vector<32x384xf32>
    %7 = vector.extract_strided_slice %2 {offsets = [0, 1], sizes = [32, 1], strides = [1, 1]} : vector<32x2xf32> to vector<32x1xf32>
    %8 = vector.broadcast %7 : vector<32x1xf32> to vector<32x384xf32>
    %9 = vector.broadcast %1 : vector<1x384xf32> to vector<32x384xf32>
    %10 = arith.mulf %8, %9 : vector<32x384xf32>
    %11 = arith.addf %6, %10 : vector<32x384xf32>
    %c0_5 = arith.constant 0 : index
    %c0_6 = arith.constant 0 : index
    %c0_7 = arith.constant 0 : index
    %12 = vector.load %arg6[%c0_5, %c0_6, %c0_7] : memref<4x32x1xf32, #tpu.memory_space<vmem>>, vector<1x32x1xf32>
    %13 = vector.shape_cast %12 : vector<1x32x1xf32> to vector<32x1xf32>
    %14 = vector.broadcast %13 : vector<32x1xf32> to vector<32x384xf32>
    %15 = arith.addf %11, %14 : vector<32x384xf32>
    %16 = math.tanh %15 : vector<32x384xf32>
    %c0_8 = arith.constant 0 : index
    %c0_9 = arith.constant 0 : index
    %c0_10 = arith.constant 0 : index
    %17 = vector.load %arg4[%c0_8, %c0_9, %c0_10] : memref<3x32x32xf32, #tpu.memory_space<vmem>>, vector<1x32x32xf32>
    %18 = vector.shape_cast %17 : vector<1x32x32xf32> to vector<32x32xf32>
    %cst = arith.constant dense<0.000000e+00> : vector<32x384xf32>
    %19 = tpu.matmul %18, %16, %cst {dimension_numbers = #tpu.dot_dimension_numbers<[1], [0], [0], [1], [0, 0, 1, 1], [], []>} : vector<32x32xf32>, vector<32x384xf32>, vector<32x384xf32> -> vector<32x384xf32>
    %c1 = arith.constant 1 : index
    %c0_11 = arith.constant 0 : index
    %c0_12 = arith.constant 0 : index
    %20 = vector.load %arg6[%c1, %c0_11, %c0_12] : memref<4x32x1xf32, #tpu.memory_space<vmem>>, vector<1x32x1xf32>
    %21 = vector.shape_cast %20 : vector<1x32x1xf32> to vector<32x1xf32>
    %22 = vector.broadcast %21 : vector<32x1xf32> to vector<32x384xf32>
    %23 = arith.addf %19, %22 : vector<32x384xf32>
    %24 = math.tanh %23 : vector<32x384xf32>
    %c1_13 = arith.constant 1 : index
    %c0_14 = arith.constant 0 : index
    %c0_15 = arith.constant 0 : index
    %25 = vector.load %arg4[%c1_13, %c0_14, %c0_15] : memref<3x32x32xf32, #tpu.memory_space<vmem>>, vector<1x32x32xf32>
    %26 = vector.shape_cast %25 : vector<1x32x32xf32> to vector<32x32xf32>
    %cst_16 = arith.constant dense<0.000000e+00> : vector<32x384xf32>
    %27 = tpu.matmul %26, %24, %cst_16 {dimension_numbers = #tpu.dot_dimension_numbers<[1], [0], [0], [1], [0, 0, 1, 1], [], []>} : vector<32x32xf32>, vector<32x384xf32>, vector<32x384xf32> -> vector<32x384xf32>
    %c2 = arith.constant 2 : index
    %c0_17 = arith.constant 0 : index
    %c0_18 = arith.constant 0 : index
    %28 = vector.load %arg6[%c2, %c0_17, %c0_18] : memref<4x32x1xf32, #tpu.memory_space<vmem>>, vector<1x32x1xf32>
    %29 = vector.shape_cast %28 : vector<1x32x1xf32> to vector<32x1xf32>
    %30 = vector.broadcast %29 : vector<32x1xf32> to vector<32x384xf32>
    %31 = arith.addf %27, %30 : vector<32x384xf32>
    %32 = math.tanh %31 : vector<32x384xf32>
    %c2_19 = arith.constant 2 : index
    %c0_20 = arith.constant 0 : index
    %c0_21 = arith.constant 0 : index
    %33 = vector.load %arg4[%c2_19, %c0_20, %c0_21] : memref<3x32x32xf32, #tpu.memory_space<vmem>>, vector<1x32x32xf32>
    %34 = vector.shape_cast %33 : vector<1x32x32xf32> to vector<32x32xf32>
    %cst_22 = arith.constant dense<0.000000e+00> : vector<32x384xf32>
    %35 = tpu.matmul %34, %32, %cst_22 {dimension_numbers = #tpu.dot_dimension_numbers<[1], [0], [0], [1], [0, 0, 1, 1], [], []>} : vector<32x32xf32>, vector<32x384xf32>, vector<32x384xf32> -> vector<32x384xf32>
    %c3 = arith.constant 3 : index
    %c0_23 = arith.constant 0 : index
    %c0_24 = arith.constant 0 : index
    %36 = vector.load %arg6[%c3, %c0_23, %c0_24] : memref<4x32x1xf32, #tpu.memory_space<vmem>>, vector<1x32x1xf32>
    %37 = vector.shape_cast %36 : vector<1x32x1xf32> to vector<32x1xf32>
    %38 = vector.broadcast %37 : vector<32x1xf32> to vector<32x384xf32>
    %39 = arith.addf %35, %38 : vector<32x384xf32>
    %40 = math.tanh %39 : vector<32x384xf32>
    %c0_25 = arith.constant 0 : index
    %c0_26 = arith.constant 0 : index
    %41 = vector.load %arg5[%c0_25, %c0_26] : memref<1x32xf32, #tpu.memory_space<vmem>>, vector<1x32xf32>
    %cst_27 = arith.constant dense<0.000000e+00> : vector<1x384xf32>
    %42 = tpu.matmul %41, %40, %cst_27 {dimension_numbers = #tpu.dot_dimension_numbers<[1], [0], [0], [1], [0, 0, 1, 1], [], []>} : vector<1x32xf32>, vector<32x384xf32>, vector<1x384xf32> -> vector<1x384xf32>
    %c0_28 = arith.constant 0 : index
    %c0_29 = arith.constant 0 : index
    %43 = vector.load %arg7[%c0_28, %c0_29] : memref<1x1xf32, #tpu.memory_space<vmem>>, vector<1x1xf32>
    %44 = vector.broadcast %43 : vector<1x1xf32> to vector<1x384xf32>
    %45 = arith.addf %42, %44 : vector<1x384xf32>
    %c0_30 = arith.constant 0 : index
    %c0_31 = arith.constant 0 : index
    %46 = vector.load %arg8[%c0_30, %c0_31] : memref<1x384xf32, #tpu.memory_space<vmem>>, vector<1x384xf32>
    tpu.vector_store %arg8[%c0_30, %c0_31], %45 {strides = array<i32>} : memref<1x384xf32, #tpu.memory_space<vmem>>, vector<1x384xf32>,
    return
  }
  func.func @transform_0(%arg0: i32) -> (i32, i32) {
    %c0_i32 = arith.constant 0 : i32
    %c0_i32_0 = arith.constant 0 : i32
    return %c0_i32, %arg0 : i32, i32
  }
  func.func @transform_1(%arg0: i32) -> (i32, i32) {
    %c0_i32 = arith.constant 0 : i32
    %c0_i32_0 = arith.constant 0 : i32
    return %c0_i32, %arg0 : i32, i32
  }
  func.func @transform_2(%arg0: i32) -> (i32, i32) {
    %c0_i32 = arith.constant 0 : i32
    %c0_i32_0 = arith.constant 0 : i32
    %c0_i32_1 = arith.constant 0 : i32
    return %c0_i32, %c0_i32_0 : i32, i32
  }
  func.func @transform_3(%arg0: i32) -> (i32, i32, i32) {
    %c0_i32 = arith.constant 0 : i32
    %c0_i32_0 = arith.constant 0 : i32
    %c0_i32_1 = arith.constant 0 : i32
    %c0_i32_2 = arith.constant 0 : i32
    return %c0_i32, %c0_i32_0, %c0_i32_1 : i32, i32, i32
  }
  func.func @transform_4(%arg0: i32) -> (i32, i32) {
    %c0_i32 = arith.constant 0 : i32
    %c0_i32_0 = arith.constant 0 : i32
    %c0_i32_1 = arith.constant 0 : i32
    return %c0_i32, %c0_i32_0 : i32, i32
  }
  func.func @transform_5(%arg0: i32) -> (i32, i32, i32) {
    %c0_i32 = arith.constant 0 : i32
    %c0_i32_0 = arith.constant 0 : i32
    %c0_i32_1 = arith.constant 0 : i32
    %c0_i32_2 = arith.constant 0 : i32
    return %c0_i32, %c0_i32_0, %c0_i32_1 : i32, i32, i32
  }
  func.func @transform_6(%arg0: i32) -> (i32, i32) {
    %c0_i32 = arith.constant 0 : i32
    %c0_i32_0 = arith.constant 0 : i32
    %c0_i32_1 = arith.constant 0 : i32
    return %c0_i32, %c0_i32_0 : i32, i32
  }
  func.func @transform_7(%arg0: i32) -> (i32, i32) {
    %c0_i32 = arith.constant 0 : i32
    %c0_i32_0 = arith.constant 0 : i32
    return %c0_i32, %arg0 : i32, i32
  }
}

</mosaic_0001>

<bundles_post_ra>
// kernel: tpu_custom_call.1
= control target key start
LH: loop header
LB: loop body
LE: loop exit
PB: predicated region body
PF: predicated region fallthrough
CT: control target
= control target key end

     0   :  { %s1557_s0 = inlined_call_operand.vmem [shape: f32[1,300], index: 0, kind: input, shape index: {}]   ;;  %s1558_s1 = inlined_call_operand.vmem [shape: f32[1,300], index: 1, kind: input, shape index: {}]   ;;  %s1559_s2 = inlined_call_operand.vmem [shape: f32[32,2], index: 2, kind: input, shape index: {}]   ;;  %s1560_s3 = inlined_call_operand.vmem [shape: f32[3,32,32], index: 3, kind: input, shape index: {}]   ;;  %s1561_s4 = inlined_call_operand.vmem [shape: f32[1,32], index: 4, kind: input, shape index: {}]   ;;  %s1562_s5 = inlined_call_operand.vmem [shape: f32[4,32,1], index: 5, kind: input, shape index: {}]   ;;  %s1563_s6 = inlined_call_operand.<no memory space> [shape: f32[1,1], index: 6, kind: input, shape index: {}]   ;;  %s1564_s7 = inlined_call_operand.hbm [shape: f32[1,300], index: 7, kind: output, shape index: {}]  }
   0x1   :  { %v12_v0 = vstv %s1563_s6 }
   0x2   :  { %13 = vst [vmem:[#allocation2] sm:$0x1] %v12_v0 }
   0x3   :  { %v34_v1 = vld [vmem:[%s1559_s2 + $0x18] sm:$0xff]  ;;  %v33_v2 = vld [vmem:[%s1559_s2 + $0x10] sm:$0xff]  ;;  %v1331_v3 = vmov 1   ;;  %v1332_v4 = vmov 0   ;;  %v32_v5 = vld [vmem:[%s1559_s2 + $0x8] sm:$0xff] }
   0x4   :  { %1206 = vset.pattern.permute.xlu0 %v1331_v3  ;;  %1207 = vset.pattern.permute.xlu1 %v1332_v4 }
   0x5   :  { %96 = vperm.xlu0 %1206, %v34_v1   ;;  %47 = vperm.xlu1 %1207, %v33_v2  }
   0x9   :  { %1208 = vset.pattern.permute.xlu1 %v1331_v3  ;;  %88 = vperm.xlu0 %1206, %v32_v5  }
   0xa   :  { %92 = vperm.xlu1 %1208, %v33_v2  }
   0xb   :  { %14 = vsyncpa [#allocation4], 0  ;;  %v31_v6 = vld [vmem:[%s1559_s2] sm:$0xff]  ;;  %v142_v7 = vld [vmem:[%s1562_s5 + $0x18] sm:$0xff]  ;;  %vm216_vm0 = vcmask 261120   ;;  %v1333_v23 = vmov 0.0   ;;  %v56_v26 = vlaneseq }
   0xc   :  { %v140_v8 = vld [vmem:[%s1562_s5 + $0x8] sm:$0xff]  ;;  %v1075_v9 = vld [vmem:[%s1562_s5 + $0x38] sm:$0xff]  ;;  %v141_v10 = vld [vmem:[%s1562_s5 + $0x10] sm:$0xff]  ;;  %293 = vmatprep.mubr.f32.mxu0 %v1333_v23  ;;  %vm1334_vm1 = vmmov 0  }
   0xd   :  { %1210 = vset.pattern.permute.xlu0 %v1332_v4  ;;  %v1073_v11 = vld [vmem:[%s1562_s5 + $0x28] sm:$0xff]  ;;  %v139_v12 = vld [vmem:[%s1562_s5] sm:$0xff]  ;;  %v1091_v13 = vld [vmem:[%s1562_s5 + $0x58] sm:$0xff]  ;;  %v1449_v27 = vshrl.u32 %v56_v26, 7  ;;  %vm1055_vm2 = vcmp.lt.s32.totalorder %v56_v26, 384 }
   0xe   :  { %1209 = vset.pattern.permute.xlu1 %v1332_v4  ;;  %52 = vperm.xlu0 %1210, %v34_v1   ;;  %v1074_v14 = vld [vmem:[%s1562_s5 + $0x30] sm:$0xff]  ;;  %v1089_v15 = vld [vmem:[%s1562_s5 + $0x48] sm:$0xff]  ;;  %v1072_v16 = vld [vmem:[%s1562_s5 + $0x20] sm:$0xff] }
   0xf   :  { %42 = vperm.xlu1 %1209, %v32_v5   ;;  %v1107_v17 = vld [vmem:[%s1562_s5 + $0x78] sm:$0xff]  ;;  %v1090_v18 = vld [vmem:[%s1562_s5 + $0x50] sm:$0xff]  ;;  %v1105_v19 = vld [vmem:[%s1562_s5 + $0x68] sm:$0xff]  ;;  %v1452_v30 = vsub.s32 0, %v1449_v27  ;;  %v62_v31 = vsub.s32 1, %v1449_v27  ;;  %v66_v33 = vsub.s32 2, %v1449_v27 }
  0x10   :  { %v1088_v20 = vld [vmem:[%s1562_s5 + $0x40] sm:$0xff]  ;;  %v1106_v24 = vld [vmem:[%s1562_s5 + $0x70] sm:$0xff] }
  0x11   :  { %v872_v21 = vld [vmem:[#allocation2] sm:$0x1] }
  0x12   :  { %37 = vperm.xlu0 %1210, %v31_v6   ;;  %v1437_v22 = vld [vmem:[%s1560_s3] sm:$0xff] }
  0x13   :  { %160 = vperm.xlu1 %1209, %v142_v7   ;;  %1155 = vmatprep.mubr.msk.f32.mxu1 %vm216_vm0, %v1437_v22  ;;  %v1104_v25 = vld [vmem:[%s1562_s5 + $0x60] sm:$0xff] }
  0x14   :  { %v30_v32 = vld [vmem:[%s1558_s1] sm:$0x7] }
  0x15   :  { %v29_v34 = vld [vmem:[%s1557_s0] sm:$0x7]  ;;  %v103_v37 = vrot.slane %v30_v32, %v1452_v30  ;;  %v107_v38 = vrot.slane %v30_v32, %v62_v31  ;;  %v111_v39 = vrot.slane %v30_v32, %v66_v33 }
  0x16   :  { %150 = vperm.xlu0 %1210, %v140_v8   ;;  %v59_v40 = vrot.slane %v29_v34, %v1452_v30  ;;  %v63_v41 = vrot.slane %v29_v34, %v62_v31  ;;  %v67_v42 = vrot.slane %v29_v34, %v66_v33 }
  0x17   :  { %1211 = vset.pattern.permute.xlu1 %v1331_v3 }
  0x18   :  { %84 = vperm.xlu1 %1211, %v31_v6  }
  0x1a   :  { %213 = vperm.xlu0 %1210, %v1075_v9  }
  0x1c   :  { %1212 = vset.pattern.permute.xlu1 %v1332_v4 }
  0x1d   :  { %155 = vperm.xlu1 %1212, %v141_v10  }
  0x1e   :  { %203 = vperm.xlu0 %1210, %v1073_v11  }
  0x21   :  { %145 = vperm.xlu1 %1212, %v139_v12  }
  0x22   :  { %442 = vperm.xlu0 %1210, %v1091_v13  }
  0x25   :  { %208 = vperm.xlu1 %1212, %v1074_v14  }
  0x26   :  { %432 = vperm.xlu0 %1210, %v1089_v15  }
  0x29   :  { %198 = vperm.xlu1 %1212, %v1072_v16  }
  0x2a   :  { %670 = vperm.xlu0 %1210, %v1107_v17  }
  0x2d   :  { %437 = vperm.xlu1 %1212, %v1090_v18  }
  0x2e   :  { %660 = vperm.xlu0 %1210, %v1105_v19  }
  0x31   :  { %427 = vperm.xlu1 %1212, %v1088_v20  }
  0x32   :  { %875 = vperm.xlu0 %1210, %v872_v21  }
  0x35   :  { %665 = vperm.xlu1 %1212, %v1106_v24  }
  0x39   :  { %655 = vperm.xlu1 %1212, %v1104_v25  }
  0x80   :  { %v48_v28 = vpop.permute.xlu1 %47  ;;  %v97_v29 = vpop.permute.xlu0 %96 }
  0x81   :  { %v124_v43 = vmul.f32 %v103_v37, %v97_v29  ;;  %v125_v44 = vmul.f32 %v107_v38, %v97_v29  ;;  %v126_v45 = vmul.f32 %v111_v39, %v97_v29  ;;  %v77_v3 = vmul.f32 %v59_v40, %v48_v28 }
  0x82   :  { %v78_v4 = vmul.f32 %v63_v41, %v48_v28  ;;  %v79_v7 = vmul.f32 %v67_v42, %v48_v28 }
  0x84   :  { %v89_v35 = vpop.permute.xlu0 %88 }
  0x85   :  { %v93_v36 = vpop.permute.xlu1 %92  ;;  %v118_v55 = vmul.f32 %v103_v37, %v89_v35  ;;  %v119_v61 = vmul.f32 %v107_v38, %v89_v35  ;;  %v120_v8 = vmul.f32 %v111_v39, %v89_v35 }
  0x86   :  { %v121_v63 = vmul.f32 %v103_v37, %v93_v36  ;;  %v122_v0 = vmul.f32 %v107_v38, %v93_v36  ;;  %v123_v1 = vmul.f32 %v111_v39, %v93_v36 }
  0x88   :  { %v133_v12 = vadd.f32 %v121_v63, %v77_v3  ;;  %v134_v13 = vadd.f32 %v122_v0, %v78_v4  ;;  %v135_v17 = vadd.f32 %v123_v1, %v79_v7 }
  0x89   :  { %v53_v46 = vpop.permute.xlu0 %52 }
  0x8a   :  { %v80_v47 = vmul.f32 %v59_v40, %v53_v46  ;;  %v81_v48 = vmul.f32 %v63_v41, %v53_v46  ;;  %v82_v49 = vmul.f32 %v67_v42, %v53_v46  ;;  %v43_v50 = vpop.permute.xlu1 %42 }
  0x8b   :  { %v74_v57 = vmul.f32 %v59_v40, %v43_v50  ;;  %v75_v62 = vmul.f32 %v63_v41, %v43_v50  ;;  %v76_v9 = vmul.f32 %v67_v42, %v43_v50 }
  0x8c   :  { %v136_v51 = vadd.f32 %v124_v43, %v80_v47  ;;  %v138_v52 = vadd.f32 %v126_v45, %v82_v49  ;;  %v137_v53 = vadd.f32 %v125_v44, %v81_v48 }
  0x8d   :  { %v38_v54 = vpop.permute.xlu0 %37  ;;  %v130_v5 = vadd.f32 %v118_v55, %v74_v57  ;;  %v131_v10 = vadd.f32 %v119_v61, %v75_v62  ;;  %v132_v24 = vadd.f32 %v120_v8, %v76_v9 }
  0x8e   :  { %v161_v56 = vpop.permute.xlu1 %160  ;;  %v71_v14 = vmul.f32 %v59_v40, %v38_v54  ;;  %v72_v15 = vmul.f32 %v63_v41, %v38_v54  ;;  %v73_v18 = vmul.f32 %v67_v42, %v38_v54  ;;  %v190_v54 = vld [vmem:[%s1560_s3 + $0x18] sm:$0xff] }
  0x8f   :  { %v172_v58 = vadd.f32 %v161_v56, %v136_v51  ;;  %v174_v59 = vadd.f32 %v161_v56, %v138_v52  ;;  %v173_v60 = vadd.f32 %v161_v56, %v137_v53  ;;  %v188_v52 = vld [vmem:[%s1560_s3 + $0x8] sm:$0xff]  ;;  %v189_v53 = vld [vmem:[%s1560_s3 + $0x10] sm:$0xff] }
  0x91   :  { %1213 = vtanh.f32 %v172_v58  ;;  %v151_v2 = vpop.permute.xlu0 %150 }
  0x92   :  { %1215 = vtanh.f32 %v174_v59  ;;  %v166_v11 = vadd.f32 %v151_v2, %v130_v5  ;;  %v167_v16 = vadd.f32 %v151_v2, %v131_v10  ;;  %v168_v32 = vadd.f32 %v151_v2, %v132_v24 }
  0x93   :  { %v85_v6 = vpop.permute.xlu1 %84  ;;  %1217 = vtanh.f32 %v173_v60 }
  0x94   :  { %v115_v19 = vmul.f32 %v103_v37, %v85_v6  ;;  %v116_v20 = vmul.f32 %v107_v38, %v85_v6  ;;  %v117_v21 = vmul.f32 %v111_v39, %v85_v6  ;;  %1219 = vtanh.f32 %v166_v11 }
  0x95   :  { %1221 = vtanh.f32 %v167_v16  ;;  %v214_v56 = vpop.permute.xlu0 %213 }
  0x96   :  { %v127_v33 = vadd.f32 %v115_v19, %v71_v14  ;;  %v128_v34 = vadd.f32 %v116_v20, %v72_v15  ;;  %v129_v35 = vadd.f32 %v117_v21, %v73_v18 }
  0x98   :  { %v156_v25 = vpop.permute.xlu1 %155 }
  0x99   :  { %v169_v29 = vadd.f32 %v156_v25, %v133_v12  ;;  %v170_v31 = vadd.f32 %v156_v25, %v134_v13  ;;  %v171_v28 = vadd.f32 %v156_v25, %v135_v17  ;;  %v204_v1 = vpop.permute.xlu0 %203  ;;  %v1085_v25 = vld [vmem:[%s1560_s3 + $0x28] sm:$0xff] }
  0x9b   :  { %1223 = vtanh.f32 %v169_v29  ;;  %v1086_v29 = vld [vmem:[%s1560_s3 + $0x30] sm:$0xff] }
  0x9c   :  { %1225 = vtanh.f32 %v170_v31  ;;  %v146_v36 = vpop.permute.xlu1 %145 }
  0x9d   :  { %1227 = vtanh.f32 %v171_v28  ;;  %v163_v40 = vadd.f32 %v146_v36, %v127_v33  ;;  %v164_v41 = vadd.f32 %v146_v36, %v128_v34  ;;  %v165_v37 = vadd.f32 %v146_v36, %v129_v35 }
  0x9e   :  { %v1214_v38 = vpop.eup %1213  ;;  %1229 = vtanh.f32 %v168_v32  ;;  %v1087_v32 = vld [vmem:[%s1560_s3 + $0x38] sm:$0xff] }
  0x9f   :  { %v1216_v39 = vpop.eup %1215  ;;  %1231 = vtanh.f32 %v163_v40 }
  0xa0   :  { %v1218_v42 = vpop.eup %1217  ;;  %1233 = vtanh.f32 %v164_v41  ;;  %1147 = vmatprep.subr.mxu1 %v1216_v39  ;;  %v209_v59 = vpop.permute.xlu1 %208 }
  0xa1   :  { %1235 = vtanh.f32 %v165_v37  ;;  %253 = vmatprep.subr.mxu0 %v1218_v42  ;;  %1148 = vmatpush3.msra.mxu1 %v1216_v39  ;;  %v1220_v43 = vpop.eup %1219  ;;  %v1516_v37 = vld [vmem:[%s1560_s3 + $0x40] sm:$0xff] }
  0xa2   :  { %254 = vmatpush1.msra.mxu0 %v1214_v38  ;;  %v1222_v44 = vpop.eup %1221  ;;  %v443_v38 = vpop.permute.xlu0 %442 }
  0xa4   :  { %v199_v6 = vpop.permute.xlu1 %198 }
  0xa8   :  { %v1224_v45 = vpop.eup %1223  ;;  %v438_v42 = vpop.permute.xlu1 %437 }
  0xa9   :  { %v1226_v46 = vpop.eup %1225 }
  0xaa   :  { %v1228_v47 = vpop.eup %1227  ;;  %255 = vmatprep.subr.mxu0 %v1226_v46  ;;  %v433_v46 = vpop.permute.xlu0 %432 }
  0xab   :  { %v1230_v48 = vpop.eup %1229  ;;  %1149 = vmatprep.subr.mxu1 %v1228_v47  ;;  %256 = vmatpush1.msra.mxu0 %v1224_v45 }
  0xac   :  { %v1232_v49 = vpop.eup %1231  ;;  %1150 = vmatpush3.msra.mxu1 %v1228_v47  ;;  %257 = vmatprep.subr.mxu0 %v1222_v44 }
  0xad   :  { %v1234_v50 = vpop.eup %1233  ;;  %1151 = vmatprep.subr.mxu1 %v1230_v48  ;;  %258 = vmatpush1.msra.mxu0 %v1220_v43 }
  0xae   :  { %v1236_v51 = vpop.eup %1235  ;;  %1152 = vmatpush3.msra.mxu1 %v1230_v48  ;;  %259 = vmatprep.subr.mxu0 %v1234_v50  ;;  %v428_v50 = vpop.permute.xlu1 %427 }
  0xaf   :  { %1153 = vmatprep.subr.mxu1 %v1236_v51  ;;  %260 = vmatpush1.msra.mxu0 %v1232_v49 }
  0xb0   :  { %1154 = vmatpush3.msra.mxu1 %v1236_v51  ;;  %1076 = vmatmul.mubr.msk.f32.vlgmr.msra.gmra.mxu0 %vm216_vm0, %v1437_v22  ;;  %v1488_v22 = vld [vmem:[%s1560_s3 + $0x20] sm:$0xff] }
  0xb1   :  { %1156 = vmatmul.mubr.msk.f32.vlgmr.msra.gmra.mxu1 %vm216_vm0, %v188_v52  ;;  %299 = vmatprep.mubr.f32.mxu0 %v1333_v23 }
  0xb2   :  { %1158 = vmatprep.mubr.msk.f32.mxu1 %vm216_vm0, %v189_v53 }
  0xb4   :  { %1077 = vmatmul.mubr.msk.f32.gmra.mxu0 %vm216_vm0, %v188_v52 }
  0xb5   :  { %1159 = vmatmul.mubr.msk.f32.gmra.mxu1 %vm216_vm0, %v190_v54  ;;  %305 = vmatprep.mubr.f32.mxu0 %v1333_v23 }
  0xb6   :  { %521 = vmatprep.mubr.f32.mxu1 %v1333_v23 }
  0xb8   :  { %1078 = vmatmul.mubr.msk.f32.gmra.mxu0 %vm216_vm0, %v189_v53 }
  0xb9   :  { %311 = vmatprep.mubr.f32.mxu0 %v1333_v23 }
  0xbc   :  { %1079 = vmatmul.mubr.msk.f32.gmra.mxu0 %vm216_vm0, %v190_v54 }
  0xbd   :  { %1169 = vmatprep.mubr.msk.f32.mxu0 %vm216_vm0, %v1488_v22 }
 0x170   :  { %v295_v55 = vpop.f32.mrf.mxu0 }
 0x171   :  { %v1157_v57 = vpop.f32.mrf.mxu1  ;;  %v296_v18 = vadd.f32 %v295_v55, %v199_v6 }
 0x172   :  { %v297_v58 = vpop.f32.mrf.mxu0  ;;  %v390_v3 = vadd.f32 %v1157_v57, %v204_v1 }
 0x173   :  { %v384_v60 = vpop.f32.mrf.mxu1  ;;  %v298_v17 = vadd.f32 %v297_v58, %v199_v6 }
 0x174   :  { %v301_v61 = vpop.f32.mrf.mxu0  ;;  %v385_v7 = vadd.f32 %v384_v60, %v199_v6  ;;  %v1102_v6 = vld [vmem:[%s1560_s3 + $0x50] sm:$0xff] }
 0x175   :  { %v1160_v62 = vpop.f32.mrf.mxu1  ;;  %v302_v16 = vadd.f32 %v301_v61, %v204_v1 }
 0x176   :  { %v400_v63 = vadd.f32 %v1160_v62, %v214_v56  ;;  %v303_v0 = vpop.f32.mrf.mxu0 }
 0x177   :  { %v394_v2 = vpop.f32.mrf.mxu1  ;;  %v304_v15 = vadd.f32 %v303_v0, %v204_v1 }
 0x178   :  { %1237 = vtanh.f32 %v400_v63  ;;  %v395_v4 = vadd.f32 %v394_v2, %v209_v59  ;;  %v307_v5 = vpop.f32.mrf.mxu0 }
 0x179   :  { %v308_v14 = vadd.f32 %v307_v5, %v209_v59 }
 0x17a   :  { %1239 = vtanh.f32 %v395_v4  ;;  %v309_v8 = vpop.f32.mrf.mxu0  ;;  %v1101_v4 = vld [vmem:[%s1560_s3 + $0x48] sm:$0xff] }
 0x17b   :  { %1241 = vtanh.f32 %v390_v3  ;;  %v310_v12 = vadd.f32 %v309_v8, %v209_v59 }
 0x17c   :  { %v313_v9 = vpop.f32.mrf.mxu0  ;;  %1243 = vtanh.f32 %v385_v7 }
 0x17d   :  { %v314_v10 = vadd.f32 %v313_v9, %v214_v56  ;;  %v1103_v9 = vld [vmem:[%s1560_s3 + $0x58] sm:$0xff] }
 0x17e   :  { %v315_v11 = vpop.f32.mrf.mxu0 }
 0x17f   :  { %v316_v13 = vadd.f32 %v315_v11, %v214_v56 }
 0x181   :  { %1245 = vtanh.f32 %v316_v13 }
 0x182   :  { %1247 = vtanh.f32 %v314_v10 }
 0x183   :  { %1249 = vtanh.f32 %v310_v12 }
 0x184   :  { %1251 = vtanh.f32 %v308_v14 }
 0x185   :  { %v1238_v19 = vpop.eup %1237  ;;  %1253 = vtanh.f32 %v304_v15 }
 0x186   :  { %1255 = vtanh.f32 %v302_v16  ;;  %1161 = vmatprep.subr.mxu0 %v1238_v19 }
 0x187   :  { %v1240_v20 = vpop.eup %1239  ;;  %1257 = vtanh.f32 %v298_v17  ;;  %1162 = vmatpush3.msra.mxu0 %v1238_v19 }
 0x188   :  { %1259 = vtanh.f32 %v296_v18  ;;  %1163 = vmatprep.subr.mxu0 %v1240_v20  ;;  %v1242_v21 = vpop.eup %1241  ;;  %v671_v18 = vpop.permute.xlu0 %670 }
 0x189   :  { %1164 = vmatpush3.msra.mxu0 %v1240_v20  ;;  %v1244_v24 = vpop.eup %1243  ;;  %v666_v20 = vpop.permute.xlu1 %665 }
 0x18a   :  { %1165 = vmatprep.subr.mxu0 %v1242_v21 }
 0x18b   :  { %1166 = vmatpush3.msra.mxu0 %v1242_v21 }
 0x18c   :  { %1167 = vmatprep.subr.mxu0 %v1244_v24 }
 0x18d   :  { %1168 = vmatpush3.msra.mxu0 %v1244_v24 }
 0x18e   :  { %v1246_v31 = vpop.eup %1245  ;;  %1170 = vmatmul.mubr.msk.f32.vlgmr.msra.gmra.mxu0 %vm216_vm0, %v1085_v25 }
 0x18f   :  { %v1248_v28 = vpop.eup %1247  ;;  %481 = vmatprep.subr.mxu1 %v1246_v31  ;;  %1172 = vmatprep.mubr.msk.f32.mxu0 %vm216_vm0, %v1086_v29 }
 0x190   :  { %v1250_v33 = vpop.eup %1249  ;;  %482 = vmatpush1.msra.mxu1 %v1248_v28 }
 0x191   :  { %v1252_v34 = vpop.eup %1251  ;;  %483 = vmatprep.subr.mxu1 %v1250_v33  ;;  %v656_v33 = vpop.permute.xlu1 %655 }
 0x192   :  { %v1254_v35 = vpop.eup %1253  ;;  %1173 = vmatmul.mubr.msk.f32.gmra.mxu0 %vm216_vm0, %v1087_v32  ;;  %484 = vmatpush1.msra.mxu1 %v1252_v34 }
 0x193   :  { %v1256_v36 = vpop.eup %1255  ;;  %485 = vmatprep.subr.mxu1 %v1254_v35  ;;  %749 = vmatprep.mubr.f32.mxu0 %v1333_v23 }
 0x194   :  { %v1258_v40 = vpop.eup %1257  ;;  %486 = vmatpush1.msra.mxu1 %v1256_v36 }
 0x195   :  { %v1260_v41 = vpop.eup %1259  ;;  %487 = vmatprep.subr.mxu1 %v1258_v40 }
 0x196   :  { %488 = vmatpush1.msra.mxu1 %v1260_v41 }
 0x197   :  { %1092 = vmatmul.mubr.msk.f32.vlgmr.msra.gmra.mxu1 %vm216_vm0, %v1488_v22 }
 0x198   :  { %527 = vmatprep.mubr.f32.mxu1 %v1333_v23 }
 0x19b   :  { %1093 = vmatmul.mubr.msk.f32.gmra.mxu1 %vm216_vm0, %v1085_v25 }
 0x19c   :  { %533 = vmatprep.mubr.f32.mxu1 %v1333_v23 }
 0x19f   :  { %1094 = vmatmul.mubr.msk.f32.gmra.mxu1 %vm216_vm0, %v1086_v29  ;;  %v661_v29 = vpop.permute.xlu0 %660 }
 0x1a0   :  { %539 = vmatprep.mubr.f32.mxu1 %v1333_v23 }
 0x1a3   :  { %1095 = vmatmul.mubr.msk.f32.gmra.mxu1 %vm216_vm0, %v1087_v32 }
 0x1a4   :  { %1183 = vmatprep.mubr.msk.f32.mxu1 %vm216_vm0, %v1516_v37 }
 0x24e   :  { %v1171_v39 = vpop.f32.mrf.mxu0 }
 0x24f   :  { %v618_v48 = vadd.f32 %v1171_v39, %v433_v46 }
 0x250   :  { %v612_v43 = vpop.f32.mrf.mxu0 }
 0x251   :  { %v613_v51 = vadd.f32 %v612_v43, %v428_v50 }
 0x252   :  { %v1174_v44 = vpop.f32.mrf.mxu0 }
 0x253   :  { %v628_v45 = vadd.f32 %v1174_v44, %v443_v38 }
 0x254   :  { %v622_v47 = vpop.f32.mrf.mxu0 }
 0x255   :  { %1261 = vtanh.f32 %v628_v45  ;;  %v623_v49 = vadd.f32 %v622_v47, %v438_v42 }
 0x257   :  { %1263 = vtanh.f32 %v623_v49  ;;  %v523_v52 = vpop.f32.mrf.mxu1 }
 0x258   :  { %1265 = vtanh.f32 %v618_v48  ;;  %v524_v8 = vadd.f32 %v523_v52, %v428_v50 }
 0x259   :  { %v525_v53 = vpop.f32.mrf.mxu1  ;;  %1267 = vtanh.f32 %v613_v51 }
 0x25a   :  { %v526_v7 = vadd.f32 %v525_v53, %v428_v50 }
 0x25b   :  { %v529_v54 = vpop.f32.mrf.mxu1 }
 0x25c   :  { %v530_v5 = vadd.f32 %v529_v54, %v433_v46 }
 0x25d   :  { %v531_v22 = vpop.f32.mrf.mxu1 }
 0x25e   :  { %v532_v3 = vadd.f32 %v531_v22, %v433_v46 }
 0x25f   :  { %v535_v55 = vpop.f32.mrf.mxu1 }
 0x260   :  { %v536_v1 = vadd.f32 %v535_v55, %v438_v42 }
 0x261   :  { %v537_v56 = vpop.f32.mrf.mxu1 }
 0x262   :  { %v1262_v57 = vpop.eup %1261  ;;  %v538_v63 = vadd.f32 %v537_v56, %v438_v42  ;;  %v871_v42 = vld [vmem:[%s1561_s4] sm:$0x1]  ;;  %s1336_s4 = smov [#allocation3]  }
 0x263   :  { %1175 = vmatprep.subr.mxu1 %v1262_v57  ;;  %v541_v58 = vpop.f32.mrf.mxu1  ;;  %s1064_s17 = sshll.u32 %s1336_s4, 4  ;;  %s1065_s17 = int_to_ptr.vmem [resolvable:$true] %s1064_s17 }
 0x264   :  { %v1264_v59 = vpop.eup %1263  ;;  %1176 = vmatpush3.msra.mxu1 %v1262_v57  ;;  %v542_v60 = vadd.f32 %v541_v58, %v443_v38  ;;  %s1309_s18 = scalar_lea.vmem %s1065_s17, 48  ;;  %s1313_s19 = scalar_lea.vmem %s1065_s17, 64 }
 0x265   :  { %1177 = vmatprep.subr.mxu1 %v1264_v59  ;;  %v543_v61 = vpop.f32.mrf.mxu1  ;;  %v1266_v62 = vpop.eup %1265  ;;  %p1310_p0 = scmp.ne.s32.totalorder %s1065_s17, %s1309_s18  ;;  %p1314_p1 = scmp.lt.s32.totalorder %s1065_s17, %s1065_s17 }
 0x266   :  { %v544_v0 = vadd.f32 %v543_v61, %v443_v38  ;;  %1178 = vmatpush3.msra.mxu1 %v1264_v59  ;;  %v1268_v2 = vpop.eup %1267  ;;  %p1315_p2 = scmp.lt.s32.totalorder %s1313_s19, %s1309_s18 }
 0x267   :  { %1179 = vmatprep.subr.mxu1 %v1266_v62 }
 0x268   :  { %1269 = vtanh.f32 %v544_v0  ;;  %1180 = vmatpush3.msra.mxu1 %v1266_v62  ;;  %v1335_v0 = vmov 1966171168   ;;  %p1316_p3 = por %p1315_p2, %p1314_p1 }
 0x269   :  { %1271 = vtanh.f32 %v542_v60  ;;  %1181 = vmatprep.subr.mxu1 %v1268_v2 }
 0x26a   :  { %1273 = vtanh.f32 %v538_v63  ;;  %1182 = vmatpush3.msra.mxu1 %v1268_v2  ;;  %v876_v2 = vpop.permute.xlu0 %875  ;;  %p1317_p4 = pnand %p1316_p3, %p1310_p0 }
 0x26b   :  { %1275 = vtanh.f32 %v536_v1  ;;  %1184 = vmatmul.mubr.msk.f32.vlgmr.msra.gmra.mxu1 %vm216_vm0, %v1101_v4  ;;  %v1031_v1 = vunpack.c.l.s4 %v1335_v0 }
 0x26c   :  { %1277 = vtanh.f32 %v532_v3  ;;  %1186 = vmatprep.mubr.msk.f32.mxu1 %vm216_vm0, %v1102_v6 }
 0x26d   :  { %1279 = vtanh.f32 %v530_v5  ;;  %v1032_v3 = vunpack.c.0.s8 %v1031_v1  ;;  %v881_v5 = vrot.slane %v876_v2, %v1452_v30 }
 0x26e   :  { %1281 = vtanh.f32 %v526_v7 }
 0x26f   :  { %1283 = vtanh.f32 %v524_v8  ;;  %1187 = vmatmul.mubr.msk.f32.gmra.mxu1 %vm216_vm0, %v1103_v9  ;;  %v1035_v8 = vsub.s32 %v1032_v3, %v1449_v27 }
 0x270   :  { %949 = vmatprep.mubr.f32.mxu1 %v1333_v23 }
 0x275   :  { %v1270_v10 = vpop.eup %1269 }
 0x276   :  { %v1272_v11 = vpop.eup %1271  ;;  %709 = vmatprep.subr.mxu0 %v1270_v10 }
 0x277   :  { %v1274_v12 = vpop.eup %1273  ;;  %710 = vmatpush1.msra.mxu0 %v1272_v11 }
 0x278   :  { %v1276_v13 = vpop.eup %1275  ;;  %711 = vmatprep.subr.mxu0 %v1274_v12 }
 0x279   :  { %v1278_v14 = vpop.eup %1277  ;;  %712 = vmatpush1.msra.mxu0 %v1276_v13 }
 0x27a   :  { %v1280_v15 = vpop.eup %1279  ;;  %713 = vmatprep.subr.mxu0 %v1278_v14 }
 0x27b   :  { %v1282_v16 = vpop.eup %1281  ;;  %714 = vmatpush1.msra.mxu0 %v1280_v15 }
 0x27c   :  { %v1284_v17 = vpop.eup %1283  ;;  %715 = vmatprep.subr.mxu0 %v1282_v16 }
 0x27d   :  { %716 = vmatpush1.msra.mxu0 %v1284_v17 }
 0x27e   :  { %1108 = vmatmul.mubr.msk.f32.vlgmr.msra.gmra.mxu0 %vm216_vm0, %v1516_v37  ;;  %1189 = vmatprep.subr.mxu0 %v1333_v23 }
 0x27f   :  { %755 = vmatprep.mubr.f32.mxu0 %v1333_v23 }
 0x282   :  { %1109 = vmatmul.mubr.msk.f32.gmra.mxu0 %vm216_vm0, %v1101_v4 }
 0x283   :  { %761 = vmatprep.mubr.f32.mxu0 %v1333_v23 }
 0x286   :  { %1110 = vmatmul.mubr.msk.f32.gmra.mxu0 %vm216_vm0, %v1102_v6 }
 0x287   :  { %767 = vmatprep.mubr.f32.mxu0 %v1333_v23 }
 0x28a   :  { %1111 = vmatmul.mubr.msk.f32.gmra.mxu0 %vm216_vm0, %v1103_v9 }
 0x28b   :  { %1197 = vmatprep.mubr.msk.f32.mxu0 %vm1334_vm1, %v1333_v23 }
 0x32b   :  { %v1185_v19 = vpop.f32.mrf.mxu1 }
 0x32c   :  { %v846_v28 = vadd.f32 %v1185_v19, %v661_v29 }
 0x32d   :  { %v840_v21 = vpop.f32.mrf.mxu1 }
 0x32e   :  { %v841_v34 = vadd.f32 %v840_v21, %v656_v33 }
 0x32f   :  { %v1188_v24 = vpop.f32.mrf.mxu1 }
 0x330   :  { %v856_v25 = vadd.f32 %v1188_v24, %v671_v18 }
 0x331   :  { %v850_v31 = vpop.f32.mrf.mxu1 }
 0x332   :  { %1285 = vtanh.f32 %v856_v25  ;;  %v851_v32 = vadd.f32 %v850_v31, %v666_v20 }
 0x334   :  { %1287 = vtanh.f32 %v851_v32 }
 0x335   :  { %1289 = vtanh.f32 %v846_v28 }
 0x336   :  { %1291 = vtanh.f32 %v841_v34 }
 0x33e   :  { %v751_v35 = vpop.f32.mrf.mxu0 }
 0x33f   :  { %v1286_v36 = vpop.eup %1285  ;;  %v752_v22 = vadd.f32 %v751_v35, %v656_v33 }
 0x340   :  { %1190 = vmatpush3.msra.mxu0 %v1286_v36  ;;  %v753_v40 = vpop.f32.mrf.mxu0 }
 0x341   :  { %v1288_v41 = vpop.eup %1287  ;;  %1191 = vmatprep.subr.mxu0 %v1333_v23  ;;  %v754_v54 = vadd.f32 %v753_v40, %v656_v33 }
 0x342   :  { %1192 = vmatpush3.msra.mxu0 %v1288_v41  ;;  %v757_v37 = vpop.f32.mrf.mxu0  ;;  %v1290_v38 = vpop.eup %1289 }
 0x343   :  { %1193 = vmatprep.subr.mxu0 %v1333_v23  ;;  %v1292_v43 = vpop.eup %1291  ;;  %v758_v53 = vadd.f32 %v757_v37, %v661_v29 }
 0x344   :  { %1194 = vmatpush3.msra.mxu0 %v1290_v38  ;;  %v759_v39 = vpop.f32.mrf.mxu0 }
 0x345   :  { %1195 = vmatprep.subr.mxu0 %v1333_v23  ;;  %v760_v52 = vadd.f32 %v759_v39, %v661_v29 }
 0x346   :  { %1196 = vmatpush3.msra.mxu0 %v1292_v43  ;;  %v763_v44 = vpop.f32.mrf.mxu0 }
 0x347   :  { %1198 = vmatmul.mubr.msk.f32.vlgmr.msra.gmra.mxu0 %vm216_vm0, %v871_v42  ;;  %v764_v51 = vadd.f32 %v763_v44, %v666_v20 }
 0x348   :  { %v765_v45 = vpop.f32.mrf.mxu0 }
 0x349   :  { %v766_v49 = vadd.f32 %v765_v45, %v666_v20 }
 0x34a   :  { %v769_v46 = vpop.f32.mrf.mxu0 }
 0x34b   :  { %v770_v47 = vadd.f32 %v769_v46, %v671_v18 }
 0x34c   :  { %v771_v48 = vpop.f32.mrf.mxu0 }
 0x34d   :  { %v772_v50 = vadd.f32 %v771_v48, %v671_v18 }
 0x34f   :  { %1293 = vtanh.f32 %v772_v50 }
 0x350   :  { %1295 = vtanh.f32 %v770_v47 }
 0x351   :  { %1297 = vtanh.f32 %v766_v49 }
 0x352   :  { %1299 = vtanh.f32 %v764_v51 }
 0x353   :  { %1301 = vtanh.f32 %v760_v52 }
 0x354   :  { %1303 = vtanh.f32 %v758_v53 }
 0x355   :  { %1305 = vtanh.f32 %v754_v54 }
 0x356   :  { %1307 = vtanh.f32 %v752_v22 }
 0x35c   :  { %v1294_v23 = vpop.eup %1293 }
 0x35d   :  { %v1296_v55 = vpop.eup %1295  ;;  %909 = vmatprep.subr.mxu1 %v1294_v23 }
 0x35e   :  { %v1298_v56 = vpop.eup %1297  ;;  %910 = vmatpush1.msra.mxu1 %v1296_v55 }
 0x35f   :  { %v1300_v57 = vpop.eup %1299  ;;  %911 = vmatprep.subr.mxu1 %v1298_v56 }
 0x360   :  { %v1302_v58 = vpop.eup %1301  ;;  %912 = vmatpush1.msra.mxu1 %v1300_v57 }
 0x361   :  { %v1304_v59 = vpop.eup %1303  ;;  %913 = vmatprep.subr.mxu1 %v1302_v58 }
 0x362   :  { %v1306_v60 = vpop.eup %1305  ;;  %914 = vmatpush1.msra.mxu1 %v1304_v59 }
 0x363   :  { %v1308_v61 = vpop.eup %1307  ;;  %915 = vmatprep.subr.mxu1 %v1306_v60 }
 0x364   :  { %916 = vmatpush1.msra.mxu1 %v1308_v61 }
 0x365   :  { %1116 = vmatmul.mubr.msk.f32.vlgmr.msra.gmra.mxu1 %vm216_vm0, %v871_v42 }
 0x407   :  { %v1022_v62 = vpop.f32.mrf.mxu0 }
 0x408   :  { %v1023_v7 = vadd.f32 %v1022_v62, %v881_v5 }
 0x409   :  { %v1199_v63 = vpop.f32.mrf.mxu0 }
 0x40a   :  { %v1043_v12 = vrot.slane %v1023_v7, %v1035_v8 }
 0x425   :  { %v951_v4 = vpop.f32.mrf.mxu1 }
 0x426   :  { %v952_v9 = vadd.f32 %v951_v4, %v881_v5 }
 0x427   :  { %v953_v6 = vpop.f32.mrf.mxu1 }
 0x428   :  { %v954_v10 = vadd.f32 %v953_v6, %v881_v5 }
 0x42a   :  { %v1029_v11 = vcombine.low %v952_v9, %v954_v10 }
 0x42c   :  { %v1036_v13 = vrot.slane %v1029_v11, %v1035_v8 }
 0x42e   :  { %v1044_v14 = vcombine.low %v1036_v13, %v1043_v12 }
 0x430   :  { %v1051_v15 = vrot.slane %v1044_v14, %v1035_v8 }
 0x432   :  { %1057 = vst.msk [vmem:[#allocation3] sm:$0x7] %vm1055_vm2, %v1051_v15 }
 0x433   :  { %1320 = shalt.err (!%p1317_p4)
}
 0x434   :  { %1067 = dma.vmem_to_hbm [thread:$0]  %s1065_s17, 48, %s1564_s7, [#allocation4]  }
 0x435   :  { %1329 = dma.done.wait [#allocation4], 48  }
 0x436   :  { %1330 = vsyncadd [#allocation4], 4294967248 }
 0x437   :  { %1071 = vsyncpa [#allocation4], 1 }

</bundles_post_ra>
